<compile_context>
chip_gen: v7x
topology: tpu7x:2x2x1
jax: 0.10.0
libtpu: 0.0.40
codegen_flags: <defaults>
</compile_context>

<pallas_src>
import numpy as np
import jax
import jax.numpy as jnp
from jax.experimental import pallas as pl
from jax.experimental.pallas import tpu as pltpu


def _identity_copy_kernel(x_ref, o_ref):
    # Hot path: elementwise identity (the module's forward returns x as-is).
    o_ref[...] = x_ref[...]


_MAX_WIDTH = 2048               # lane-dense last dim (multiple of 128) -> unmasked vst
_TARGET_BLOCK_BYTES = 8 << 20   # ~8 MiB blocks (perf review: amortize 0.35us/step)
_VMEM_LIMIT_BYTES = 48 << 20    # 2x(in+out) double-buffered 8 MiB blocks = 32 MiB < 48


def _choose_width(total):
    """Largest power-of-two multiple of 128 (<= _MAX_WIDTH) dividing `total`."""
    w = _MAX_WIDTH
    while w > 128 and total % w != 0:
        w //= 2
    return w


def _pallas_identity_copy(x):
    """Materialize an identity copy of `x` with a tiled Pallas DMA kernel."""
    orig_shape = x.shape
    dtype = jnp.dtype(x.dtype)
    total = x.size
    itemsize = dtype.itemsize

    # Guards: empty arrays, 4-bit packed dtypes (sublane packing needs 64 rows),
    # and totals not divisible by 128.  The forward is an exact identity, so the
    # correct AND cheapest handling is a pass-through -- never pad/slice, which
    # would triple the HBM traffic.
    if total == 0 or "4" in dtype.name or total % 128 != 0:
        return x

    # Lane-dense 2-D slab with a wide last dim (pure reshape, no data movement).
    width = _choose_width(total)
    rows = total // width

    # Dtype-aware sublane granularity: f32 -> 8, bf16 -> 16, int8/fp8 -> 32.
    sub = max(8, 32 // itemsize)
    # Cap tile rows so one block is ~8 MiB (multiple of the sublane packing).
    cap = max(sub, (_TARGET_BLOCK_BYTES // (width * itemsize)) // sub * sub)

    if rows <= sub:
        # Tiny input: a single block equal to the full rows dim (always legal).
        tile_rows = rows
    elif rows <= cap:
        # Never emit grid=(1,) when we can split: >=4 blocks restore
        # double-buffered read/write overlap and feed both v7x TensorCores.
        tile_rows = max(sub, (rows // 4) // sub * sub)
    else:
        tile_rows = cap

    grid = (pl.cdiv(rows, tile_rows),)
    x2d = x.reshape(rows, width)

    out2d = pl.pallas_call(
        _identity_copy_kernel,
        out_shape=jax.ShapeDtypeStruct((rows, width), dtype),
        grid_spec=pltpu.PrefetchScalarGridSpec(
            num_scalar_prefetch=0,
            grid=grid,
            in_specs=[pl.BlockSpec((tile_rows, width), lambda i: (i, 0))],
            out_specs=pl.BlockSpec((tile_rows, width), lambda i: (i, 0)),
        ),
        # No input_output_aliases: aliasing a non-donated reshape view of the
        # caller's x makes XLA insert a hidden defensive copy, negating the win.
        compiler_params=pltpu.CompilerParams(
            dimension_semantics=("parallel",),      # shard blocks across TCs (v7x)
            vmem_limit_bytes=_VMEM_LIMIT_BYTES,     # explicit; <= physical on all gens
        ),
    )(x2d)

    return out2d.reshape(orig_shape)


def log_softmax_module_forward(x, *, materialize_copy=False):
    """Forward of the (identity) `LogSoftmax` module: returns x unchanged.

    NOTE: the upstream module never applies log_softmax -- forward(x) returns x
    as-is -- so the zero-cost path simply returns the input (0 bytes of HBM
    traffic; no tiling can beat removing the copy).  Pass materialize_copy=True
    to route through the Pallas identity-copy kernel (benchmarking, or when an
    explicitly materialized output buffer is required).
    """
    # TODO(synk): upstream forward also does print('call config LogSoftmax.forward');
    # that Python-side logging has no Pallas equivalent and is omitted.
    if not materialize_copy:
        return x
    return _pallas_identity_copy(x)


if __name__ == "__main__":
    # Module __init__ has no parameters (dim arg is ignored), so nothing to init.
    key = jax.random.PRNGKey(0)
    x = jax.random.normal(key, (2, 4, 16, 16), dtype=jnp.float32)  # NCHW
    x_host = np.asarray(x)

    # Default (recommended) path: exact pass-through, no kernel launch at all.
    y_fast = log_softmax_module_forward(x)
    assert y_fast is x

    # Pallas path: exercised once so the identity-copy kernel compiles and runs.
    y = log_softmax_module_forward(x, materialize_copy=True)
    y = jax.block_until_ready(y)

    assert y.shape == x_host.shape and y.dtype == x_host.dtype
    assert np.allclose(np.asarray(y), x_host)  # forward is identity
    print("KERNEL_OK")
</pallas_src>

<mosaic_0001>
module attributes {stable_mosaic.version = 11 : i64} {
  func.func @_identity_copy_kernel(%arg0: i32, %arg1: memref<1x2048xf32, #tpu.memory_space<vmem>>, %arg2: memref<1x2048xf32, #tpu.memory_space<vmem>>) attributes {dimension_semantics = [#tpu.dimension_semantics<parallel>], iteration_bounds = array<i64: 1>, scalar_prefetch = 0 : i64, scratch_operands = 0 : i64, tpu.core_type = #tpu.core_type<tc>, window_params = [{transform_indices = @transform_0, window_bounds = array<i64: 1, 2048>}, {transform_indices = @transform_1, window_bounds = array<i64: 1, 2048>}]} {
    %c0 = arith.constant 0 : index
    %c0_0 = arith.constant 0 : index
    %0 = vector.load %arg1[%c0, %c0_0] : memref<1x2048xf32, #tpu.memory_space<vmem>>, vector<1x2048xf32>
    %c0_1 = arith.constant 0 : index
    %c0_2 = arith.constant 0 : index
    %1 = vector.load %arg2[%c0_1, %c0_2] : memref<1x2048xf32, #tpu.memory_space<vmem>>, vector<1x2048xf32>
    tpu.vector_store %arg2[%c0_1, %c0_2], %0 {strides = array<i32>} : memref<1x2048xf32, #tpu.memory_space<vmem>>, vector<1x2048xf32>,
    return
  }
  func.func @transform_0(%arg0: i32) -> (i32, i32) {
    %c0_i32 = arith.constant 0 : i32
    %c0_i32_0 = arith.constant 0 : i32
    return %arg0, %c0_i32 : i32, i32
  }
  func.func @transform_1(%arg0: i32) -> (i32, i32) {
    %c0_i32 = arith.constant 0 : i32
    %c0_i32_0 = arith.constant 0 : i32
    return %arg0, %c0_i32 : i32, i32
  }
}

</mosaic_0001>

<bundles_post_ra>
// kernel: tpu_custom_call.1
= control target key start
LH: loop header
LB: loop body
LE: loop exit
PB: predicated region body
PF: predicated region fallthrough
CT: control target
= control target key end

     0   :  { %6 = vsyncpa [#allocation3], 0  ;;  %s126_s0 = inlined_call_operand.hbm [shape: f32[1,2048], index: 0, kind: input, shape index: {}]   ;;  %s127_s1 = inlined_call_operand.hbm [shape: f32[1,2048], index: 1, kind: output, shape index: {}]  }
   0x1   :  { %7 = vsyncpa [#allocation4], 0  ;;  %s90_s6 = smov [#allocation2]   ;;  %s42_s10 = scalar_lea.hbm %s126_s0, 256 }
   0x2   :  { %s14_s7 = sshll.u32 %s90_s6, 4  ;;  %p43_p0 = scmp.ne.s32.totalorder %s126_s0, %s42_s10  ;;  %s15_s7 = int_to_ptr.vmem [resolvable:$true] %s14_s7 }
   0x3   :  { %p46_p1 = scmp.lt.u32.totalorder %s42_s10, %s126_s0 }
   0x5   :  { %p48_p2 = pnand %p46_p1, %p43_p0 }
   0x7   :  { %51 = shalt.err (!%p48_p2)
}
   0x8   :  { %s52_s15 = scalar_lea.vmem %s15_s7, 256  ;;  %p57_p4 = scmp.lt.s32.totalorder %s15_s7, %s15_s7 }
   0x9   :  { %p53_p3 = scmp.ne.s32.totalorder %s15_s7, %s52_s15  ;;  %p58_p5 = scmp.lt.s32.totalorder %s52_s15, %s52_s15 }
   0xb   :  { %p59_p6 = por %p58_p5, %p57_p4 }
   0xd   :  { %p60_p7 = pnand %p59_p6, %p53_p3 }
   0xf   :  { %63 = shalt.err (!%p60_p7)
}
  0x10   :  { %17 = dma.hbm_to_vmem [thread:$0]  %s126_s0, 256, %s15_s7, [#allocation3]  }
  0x11   :  { %86 = dma.done.wait [#allocation3], 256  }
  0x12   :  { %87 = vsyncadd [#allocation3], 4294967040  ;;  %s91_s18 = smov [#allocation5]   ;;  %v21_v0 = vld [vmem:[#allocation2] sm:$0xff]  ;;  %v22_v1 = vld [vmem:[#allocation2 + $0x8] sm:$0xff] }
  0x13   :  { %s31_s19 = sshll.u32 %s91_s18, 4  ;;  %23 = vst [vmem:[#allocation5] sm:$0xff] %v21_v0  ;;  %24 = vst [vmem:[#allocation5 + $0x8] sm:$0xff] %v22_v1  ;;  %s32_s19 = int_to_ptr.vmem [resolvable:$true] %s31_s19 }
  0x14   :  { %s64_s20 = scalar_lea.vmem %s32_s19, 256  ;;  %p69_p9 = scmp.lt.s32.totalorder %s32_s19, %s32_s19 }
  0x15   :  { %p65_p8 = scmp.ne.s32.totalorder %s32_s19, %s64_s20  ;;  %p70_p10 = scmp.lt.s32.totalorder %s64_s20, %s64_s20 }
  0x17   :  { %p71_p11 = por %p70_p10, %p69_p9 }
  0x19   :  { %p72_p12 = pnand %p71_p11, %p65_p8 }
  0x1b   :  { %75 = shalt.err (!%p72_p12)
}
  0x1c   :  { %s76_s0 = scalar_lea.hbm %s127_s1, 256 }
  0x1d   :  { %p77_p13 = scmp.ne.s32.totalorder %s127_s1, %s76_s0  ;;  %p80_p0 = scmp.lt.u32.totalorder %s76_s0, %s127_s1 }
  0x1f   :  { %p82_p1 = pnand %p80_p0, %p77_p13 }
  0x21   :  { %85 = shalt.err (!%p82_p1)
}
  0x22   :  { %34 = dma.vmem_to_hbm [thread:$0]  %s32_s19, 256, %s127_s1, [#allocation4]  }
  0x23   :  { %88 = dma.done.wait [#allocation4], 256  }
  0x24   :  { %89 = vsyncadd [#allocation4], 4294967040 }
  0x25   :  { %38 = vsyncpa [#allocation3], 1 }
  0x26   :  { %39 = vsyncpa [#allocation4], 1 }

</bundles_post_ra>
